<compile_context>
chip_gen: v6e
topology: v6e:2x2x1
jax: 0.10.0
libtpu: 0.0.40
codegen_flags: <defaults>
</compile_context>

<pallas_src>
import functools
import math

import jax
import jax.numpy as jnp
from jax.experimental import pallas as pl
from jax.experimental.pallas import tpu as pltpu


def _round_up(x, m):
    return ((x + m - 1) // m) * m


def _vmem_limit_bytes():
    try:
        info = pltpu.get_tpu_info()
        cap = int(getattr(info, "vmem_capacity_bytes", 128 * 1024 * 1024))
        return min((cap * 3) // 4, 100 * 1024 * 1024)
    except Exception:
        return 64 * 1024 * 1024


_VMEM_LIMIT = _vmem_limit_bytes()


# ---------------------------------------------------------------------------
# Fused conv kernel: in-kernel im2col (taps folded into K), spatial in lanes
# ---------------------------------------------------------------------------
def _make_conv_kernel(offsets, tm, act, slope):
    n_taps = len(offsets)

    def kernel(xa_ref, xb_ref, w_ref, b_ref, o_ref):
        if n_taps == 1 and offsets[0] == 0:
            p = xa_ref[...]                                   # (Cin, TM)
        else:
            # current block + next block = halo window; static lane slices.
            buf = jnp.concatenate([xa_ref[...], xb_ref[...]], axis=1)
            p = jnp.concatenate([buf[:, off:off + tm] for off in offsets],
                                axis=0)                       # (T*Cin, TM)
        # Single MXU matmul with contraction depth K = T*Cin.
        y = jnp.dot(w_ref[...], p, preferred_element_type=jnp.float32)
        y = y + b_ref[...]                                    # fused bias
        if act == "leaky":                                    # fused activation
            y = jnp.where(y >= 0.0, y, slope * y)
        elif act == "relu":
            y = jnp.maximum(y, 0.0)
        o_ref[...] = y.astype(o_ref.dtype)

    return kernel


def _conv_mxu(xf, w2, bias, offsets, tm, n_tiles, act, slope, out_dtype):
    """xf: (Cin_p, (n_tiles+1)*tm) bf16.  w2: (Cout, K) bf16.  bias: (Cout,1) f32."""
    cin_p, _ = xf.shape
    cout, k = w2.shape
    kernel = _make_conv_kernel(offsets, tm, act, slope)

    flops = int(2 * cout * k * n_tiles * tm)
    bytes_accessed = int(
        2 * xf.size * xf.dtype.itemsize            # two aliased input operands
        + w2.size * w2.dtype.itemsize
        + bias.size * 4
        + n_tiles * tm * cout * jnp.dtype(out_dtype).itemsize)

    return pl.pallas_call(
        kernel,
        out_shape=jax.ShapeDtypeStruct((cout, n_tiles * tm), out_dtype),
        grid_spec=pltpu.PrefetchScalarGridSpec(
            num_scalar_prefetch=0,
            grid=(n_tiles,),
            in_specs=[
                pl.BlockSpec((cin_p, tm), lambda i: (0, i)),      # current
                pl.BlockSpec((cin_p, tm), lambda i: (0, i + 1)),  # halo block
                pl.BlockSpec((cout, k), lambda i: (0, 0)),        # weights
                pl.BlockSpec((cout, 1), lambda i: (0, 0)),        # bias
            ],
            out_specs=pl.BlockSpec((cout, tm), lambda i: (0, i)),
        ),
        compiler_params=pltpu.CompilerParams(
            dimension_semantics=("parallel",),
            vmem_limit_bytes=_VMEM_LIMIT),
        cost_estimate=pl.CostEstimate(flops=flops, transcendentals=0,
                                      bytes_accessed=bytes_accessed),
    )(xf, xf, w2, bias)


# ---------------------------------------------------------------------------
# Conv wrappers (channels-first: x is (Cin, B, H, W))
# ---------------------------------------------------------------------------
def _space_to_depth2(x):
    c, b, h, w = x.shape
    x = x.reshape(c, b, h // 2, 2, w // 2, 2)       # (c,b,h2,p,w2,q)
    x = jnp.transpose(x, (3, 5, 0, 1, 2, 4))        # (p,q,c,b,h2,w2)
    return x.reshape(4 * c, b, h // 2, w // 2)


def _s2d_weight(w4):
    """Exact rewrite of a 4x4/stride-2/pad-1 conv as a 3x3 conv over s2d input."""
    kh, kw, cin, cout = w4.shape
    w3 = jnp.zeros((3, 3, 2, 2, cin, cout), w4.dtype)
    for big_p in range(3):
        for p in range(2):
            di = 2 * big_p + p - 1
            if di < 0 or di >= kh:
                continue
            for big_q in range(3):
                for q in range(2):
                    dj = 2 * big_q + q - 1
                    if dj < 0 or dj >= kw:
                        continue
                    w3 = w3.at[big_p, big_q, p, q].set(w4[di, dj])
    return w3.reshape(3, 3, 4 * cin, cout)


def _weight_to_k_major(w, cin_p):
    """(kh,kw,Cin,Cout) HWIO -> (Cout, kh*kw*Cin_p) with K ordered (tap, ci)."""
    kh, kw, cin, cout = w.shape
    if cin_p != cin:
        w = jnp.pad(w, ((0, 0), (0, 0), (0, cin_p - cin), (0, 0)))
    return jnp.transpose(w, (3, 0, 1, 2)).reshape(cout, kh * kw * cin_p)


def conv2d(x, w, b=None, *, stride=1, padding=0, pad_mode="zeros",
           act=None, slope=0.2, out_dtype=jnp.bfloat16):
    """x: (Cin,B,H,W); w: (kh,kw,Cin,Cout) f32 -> (Cout,B,Ho,Wo)."""
    if stride == 2:
        assert w.shape[0] == 4 and w.shape[1] == 4 and padding == 1
        assert pad_mode == "zeros", "strided conv only supports zero padding"
        assert x.shape[2] % 2 == 0 and x.shape[3] % 2 == 0
        x = _space_to_depth2(x)
        w = _s2d_weight(w)
        padding = 1
    kh, kw, cin, cout = w.shape
    if padding > 0:
        mode = "reflect" if pad_mode == "reflect" else "constant"
        x = jnp.pad(x, ((0, 0), (0, 0), (padding, padding), (padding, padding)),
                    mode=mode)
    c, bsz, hp, wp = x.shape
    assert c == cin
    ho, wo = hp - kh + 1, wp - kw + 1
    offsets = tuple(i * wp + j for i in range(kh) for j in range(kw))
    max_off = offsets[-1]

    r = bsz * hp * wp
    tm = min(512, _round_up(r, 128))
    tm = max(tm, _round_up(max(max_off, 1), 128))
    n_tiles = pl.cdiv(r, tm)
    r_in = (n_tiles + 1) * tm                    # +1 tile: halo for last tile

    cin_p = _round_up(cin, 8)
    xf = x.reshape(cin, r).astype(jnp.bfloat16)
    xf = jnp.pad(xf, ((0, cin_p - cin), (0, r_in - r)))
    w2 = _weight_to_k_major(w, cin_p).astype(jnp.bfloat16)
    if b is None:
        b = jnp.zeros((cout,), jnp.float32)
    bias = b.astype(jnp.float32).reshape(cout, 1)

    yf = _conv_mxu(xf, w2, bias, offsets, tm, n_tiles, act, slope, out_dtype)
    y = yf[:, :r].reshape(cout, bsz, hp, wp)[:, :, :ho, :wo]
    return y


def conv_transpose2x2(x, w, b):
    """ConvTranspose2d(k=2, s=2).  x: (Cin,B,h,w); w: (Cin,2,2,Cout)."""
    cin, _, _, cout = w.shape
    w1 = w.reshape(1, 1, cin, 4 * cout)                  # 1x1 conv, (p,q,co) order
    b1 = jnp.tile(b.astype(jnp.float32), 4)
    y = conv2d(x, w1, b1, padding=0)                     # (4*cout, B, h, w)
    _, bsz, h, wd = y.shape
    y = y.reshape(2, 2, cout, bsz, h, wd)                # (p,q,co,b,i,j)
    y = jnp.transpose(y, (2, 3, 4, 0, 5, 1))             # (co,b,i,p,j,q)
    return y.reshape(cout, bsz, 2 * h, 2 * wd)


def _combine_conv1_identity(w1, b1, wid, bid):
    """Fuse a 3x3 conv and a 1x1 identity conv (same input) into one conv."""
    kh, kw, _, _ = w1.shape
    w_id3 = jnp.zeros_like(w1).at[kh // 2, kw // 2].set(wid[0, 0])
    return jnp.concatenate([w1, w_id3], axis=-1), jnp.concatenate([b1, bid], axis=0)


# ---------------------------------------------------------------------------
# Elementwise / norm glue (plain JAX, fused by XLA); channels-first layout
# ---------------------------------------------------------------------------
def leaky_relu(x, slope=0.2):
    return jnp.where(x >= 0, x, slope * x)


def batch_norm(x, eps=1e-5):
    # nn.BatchNorm2d(affine=False), training-mode batch statistics.
    x32 = x.astype(jnp.float32)
    mean = jnp.mean(x32, axis=(1, 2, 3), keepdims=True)
    var = jnp.var(x32, axis=(1, 2, 3), keepdims=True)
    return (x32 - mean) * jax.lax.rsqrt(var + eps)


def instance_norm(x, weight, bias, eps=1e-5):
    x32 = x.astype(jnp.float32)
    mean = jnp.mean(x32, axis=(2, 3), keepdims=True)
    var = jnp.var(x32, axis=(2, 3), keepdims=True)
    y = (x32 - mean) * jax.lax.rsqrt(var + eps)
    y = y * weight.reshape(-1, 1, 1, 1) + bias.reshape(-1, 1, 1, 1)
    return y.astype(x.dtype)


def nearest_resize(x, ht, wt):
    c, b, h, w = x.shape
    if h == ht and w == wt:
        return x
    hi = (jnp.arange(ht) * h) // ht
    wi = (jnp.arange(wt) * w) // wt
    return x[:, :, hi][:, :, :, wi]


# ---------------------------------------------------------------------------
# Network blocks
# ---------------------------------------------------------------------------
def resnet_block(p, x, slope=0.2):
    y = conv2d(x, p["c1"]["w"], p["c1"]["b"], padding=1, pad_mode="reflect",
               act="leaky", slope=slope)
    y = conv2d(y, p["c2"]["w"], p["c2"]["b"], padding=1, pad_mode="reflect")
    return leaky_relu(x + y, slope)


def down_conv_block(p, x, slope=0.2):
    y = conv2d(x, p["c1"]["w"], p["c1"]["b"], padding=1, pad_mode="reflect",
               act="leaky", slope=slope)
    y = y[:, :, ::2, ::2]            # nn.Upsample(scale_factor=1/2, 'nearest')
    y = conv2d(y, p["c2"]["w"], p["c2"]["b"], padding=1, pad_mode="reflect",
               act="leaky", slope=slope)
    return y


def kernel_encoder(p, z):
    h = z
    for i in range(3):
        h = resnet_block(p[f"res{i}"], h)
    latent1 = conv2d(h, p["proj"]["w"], p["proj"]["b"], padding=1, act="leaky")
    latent2 = down_conv_block(p["down1"], latent1)
    latent3 = down_conv_block(p["down2"], latent2)
    latent4 = down_conv_block(p["down3"], latent3)
    return [latent1, latent2, latent3, latent4]


def spade(p, x, segmap):
    normalized = batch_norm(x)
    seg = nearest_resize(segmap, x.shape[2], x.shape[3])
    actv = conv2d(seg, p["shared"]["w"], p["shared"]["b"], padding=1, act="relu")
    c = x.shape[0]
    # gamma and beta convolutions fused into a single matmul (cout = 2c).
    w_gb = jnp.concatenate([p["gamma"]["w"], p["beta"]["w"]], axis=-1)
    b_gb = jnp.concatenate([p["gamma"]["b"], p["beta"]["b"]], axis=0)
    gb = conv2d(actv, w_gb, b_gb, padding=1)
    gamma, beta = gb[:c], gb[c:]
    return normalized * (1.0 + gamma) + beta


def spade_resnet_block(p, x, seg):
    # fin == fout -> identity shortcut.
    dx = conv2d(leaky_relu(spade(p["norm_0"], x, seg), 0.2),
                p["conv_0"]["w"], p["conv_0"]["b"], padding=1)
    return x + dx


def unet_conv_block(p, x, slope=0.2):
    cout = p["conv2"]["w"].shape[-1]
    w_c, b_c = _combine_conv1_identity(p["conv1"]["w"], p["conv1"]["b"],
                                       p["identity"]["w"], p["identity"]["b"])
    both = conv2d(x, w_c, b_c, padding=1)          # conv1 and identity fused
    out, ident = both[:cout], both[cout:]
    if p["use_hin"]:
        o1, o2 = jnp.split(out, 2, axis=0)
        o1 = instance_norm(o1, p["in_w"], p["in_b"])
        out = jnp.concatenate([o1, o2], axis=0)
    out = leaky_relu(out, slope)
    out = conv2d(out, p["conv2"]["w"], p["conv2"]["b"], padding=1,
                 act="leaky", slope=slope)
    out = out + ident
    if "down" in p:
        out_down = conv2d(out, p["down"]["w"], None, stride=2, padding=1)
        return out_down, out
    return out


def unet_up_block(p, x, bridge, slope=0.2):
    up = conv_transpose2x2(x, p["up"]["w"], p["up"]["b"])
    out = jnp.concatenate([up, bridge], axis=0)
    return unet_conv_block(p["conv_block"], out, slope)


def bpn_deblur(params, x_nchw, kernel_field):
    # kernel_field: (B, Kh, Kw, h, w); x: (B, C, H, W) NCHW.
    kf = jnp.flip(kernel_field, axis=(1, 2))               # torch.flip(dims=[1,2])
    b, kh, kw, hk, wk = kf.shape
    kf = kf.reshape(b, kh * kw, hk, wk)                    # .view(B, -1, h, w)
    kf = jnp.transpose(kf, (1, 0, 2, 3)).astype(jnp.bfloat16)   # (C, B, h, w)
    image = jnp.transpose(x_nchw, (1, 0, 2, 3))            # (C, B, H, W), f32
    image_bf = image.astype(jnp.bfloat16)

    latents = kernel_encoder(params["kenc"], kf)

    x1 = conv2d(image_bf, params["conv01"]["w"], params["conv01"]["b"], padding=1)
    depth = params["depth"]
    encs = []
    for i in range(depth):
        blk = params["down"][i]
        if i + 1 < depth:
            x1, x1_up = unet_conv_block(blk, x1)
            encs.append(x1_up)
        else:
            x1 = unet_conv_block(blk, x1)

    for i in range(depth - 1):
        temps2 = spade_resnet_block(params["ad1"][depth - 2 - i],
                                    encs[-i - 1], latents[-1 - i])
        x1 = unet_up_block(params["up"][i], x1, temps2)

    out = conv2d(x1, params["last"]["w"], params["last"]["b"], padding=1,
                 out_dtype=jnp.float32)
    out = out + image
    return jnp.transpose(out, (1, 0, 2, 3))                # back to NCHW


# ---------------------------------------------------------------------------
# Deterministic parameter construction
# ---------------------------------------------------------------------------
class KeyGen:
    def __init__(self, seed):
        self._key = jax.random.PRNGKey(seed)

    def __call__(self):
        self._key, sub = jax.random.split(self._key)
        return sub


def init_params(kg, in_chn=3, kernel_chn=25, wf=8, depth=5,
                hin_left=0, hin_right=4):
    def conv_p(cin, cout, k, bias=True):
        s = 1.0 / math.sqrt(cin * k * k)
        p = {"w": jax.random.uniform(kg(), (k, k, cin, cout),
                                     dtype=jnp.float32, minval=-s, maxval=s)}
        p["b"] = (jax.random.uniform(kg(), (cout,), dtype=jnp.float32,
                                     minval=-s, maxval=s) if bias else None)
        return p

    params = {"depth": depth}

    kenc = {}
    for i in range(3):
        kenc[f"res{i}"] = {"c1": conv_p(kernel_chn, kernel_chn, 3),
                           "c2": conv_p(kernel_chn, kernel_chn, 3)}
    kenc["proj"] = conv_p(kernel_chn, wf, 3)
    kenc["down1"] = {"c1": conv_p(wf, 2 * wf, 3), "c2": conv_p(2 * wf, 2 * wf, 3)}
    kenc["down2"] = {"c1": conv_p(2 * wf, 4 * wf, 3), "c2": conv_p(4 * wf, 4 * wf, 3)}
    kenc["down3"] = {"c1": conv_p(4 * wf, 8 * wf, 3), "c2": conv_p(8 * wf, 8 * wf, 3)}
    params["kenc"] = kenc

    params["conv01"] = conv_p(in_chn, wf, 3)

    down = []
    prev = wf
    for i in range(depth):
        out = (2 ** i) * wf
        use_hin = (hin_left <= i <= hin_right)
        blk = {"conv1": conv_p(prev, out, 3),
               "conv2": conv_p(out, out, 3),
               "identity": conv_p(prev, out, 1),
               "use_hin": use_hin}
        if use_hin:
            blk["in_w"] = jnp.ones((out // 2,), jnp.float32)
            blk["in_b"] = jnp.zeros((out // 2,), jnp.float32)
        if i + 1 < depth:
            blk["down"] = conv_p(out, out, 4, bias=False)
        down.append(blk)
        prev = out
    params["down"] = down

    ad1 = []
    nhidden = 128
    for i in range(depth - 1):
        c = (2 ** i) * wf
        ad1.append({"conv_0": conv_p(c, c, 3),
                    "norm_0": {"shared": conv_p(c, nhidden, 3),
                               "gamma": conv_p(nhidden, c, 3),
                               "beta": conv_p(nhidden, c, 3)}})
    params["ad1"] = ad1

    up = []
    prev = (2 ** (depth - 1)) * wf
    for i in reversed(range(depth - 1)):
        out = (2 ** i) * wf
        s = 1.0 / math.sqrt(prev * 2 * 2)
        up_w = jax.random.uniform(kg(), (prev, 2, 2, out), dtype=jnp.float32,
                                  minval=-s, maxval=s)
        up_b = jax.random.uniform(kg(), (out,), dtype=jnp.float32,
                                  minval=-s, maxval=s)
        cb = {"conv1": conv_p(prev, out, 3),
              "conv2": conv_p(out, out, 3),
              "identity": conv_p(prev, out, 1),
              "use_hin": False}
        up.append({"up": {"w": up_w, "b": up_b}, "conv_block": cb})
        prev = out
    params["up"] = up

    params["last"] = conv_p(prev, in_chn, 3)
    return params


# ---------------------------------------------------------------------------
# Plain-JAX reference conv (channels-first) for the small self-check
# ---------------------------------------------------------------------------
def _ref_conv(x, w, b, stride, padding):
    kh, kw, cin, cout = w.shape
    if padding:
        x = jnp.pad(x, ((0, 0), (0, 0), (padding, padding), (padding, padding)))
    c, n, hp, wp = x.shape
    ho = (hp - kh) // stride + 1
    wo = (wp - kw) // stride + 1
    acc = jnp.zeros((cout, n, ho, wo), jnp.float32)
    for i in range(kh):
        for j in range(kw):
            xs = x[:, :, i:i + stride * ho:stride, j:j + stride * wo:stride]
            acc = acc + jnp.einsum("cnhw,cd->dnhw", xs.astype(jnp.float32),
                                   w[i, j].astype(jnp.float32))
    return acc if b is None else acc + b.reshape(-1, 1, 1, 1)


# ---------------------------------------------------------------------------
# Demo
# ---------------------------------------------------------------------------
if __name__ == "__main__":
    # Self-check of the fused Pallas conv (3x3/s1 and 4x4/s2 paths).
    k1, k2, k3, k4 = jax.random.split(jax.random.PRNGKey(1), 4)
    xs = jax.random.normal(k1, (6, 2, 8, 8), jnp.float32)          # (C,B,H,W)
    w3 = jax.random.uniform(k2, (3, 3, 6, 5), jnp.float32, -0.2, 0.2)
    b3 = jax.random.uniform(k3, (5,), jnp.float32, -0.2, 0.2)
    got = conv2d(xs.astype(jnp.bfloat16), w3, b3, padding=1).astype(jnp.float32)
    ref = _ref_conv(xs, w3, b3, 1, 1)
    assert jnp.linalg.norm(got - ref) / jnp.linalg.norm(ref) < 0.05
    w4 = jax.random.uniform(k4, (4, 4, 6, 5), jnp.float32, -0.2, 0.2)
    got2 = conv2d(xs.astype(jnp.bfloat16), w4, None,
                  stride=2, padding=1).astype(jnp.float32)
    ref2 = _ref_conv(xs, w4, None, 2, 1)
    assert jnp.linalg.norm(got2 - ref2) / jnp.linalg.norm(ref2) < 0.05

    # Full forward pass.
    B, C, H, W = 2, 3, 32, 32        # depth-5 U-Net -> 2x2 bottleneck
    KH = KW = 5                      # per-pixel blur kernel size (kernel_chn=25)
    WF, DEPTH = 8, 5

    params = init_params(KeyGen(0), in_chn=C, kernel_chn=KH * KW,
                         wf=WF, depth=DEPTH)

    k_x, k_kf = jax.random.split(jax.random.PRNGKey(0), 2)
    x = jax.random.normal(k_x, (B, C, H, W), dtype=jnp.float32)
    kernel_field = jax.random.normal(k_kf, (B, KH, KW, H, W), dtype=jnp.float32)

    fwd = jax.jit(functools.partial(bpn_deblur, params))
    out = jax.block_until_ready(fwd(x, kernel_field))

    assert out.shape == (B, C, H, W), out.shape
    assert bool(jnp.all(jnp.isfinite(out)))
    print("KERNEL_OK")
</pallas_src>

<mosaic_0001>
module attributes {stable_mosaic.version = 11 : i64} {
  func.func @kernel(%arg0: i32, %arg1: memref<8x256xbf16, #tpu.memory_space<vmem>>, %arg2: memref<8x256xbf16, #tpu.memory_space<vmem>>, %arg3: memref<5x72xbf16, #tpu.memory_space<vmem>>, %arg4: memref<5x1xf32, #tpu.memory_space<vmem>>, %arg5: memref<5x256xbf16, #tpu.memory_space<vmem>>) attributes {dimension_semantics = [#tpu.dimension_semantics<parallel>], iteration_bounds = array<i64: 1>, scalar_prefetch = 0 : i64, scratch_operands = 0 : i64, tpu.core_type = #tpu.core_type<tc>, window_params = [{transform_indices = @transform_0, window_bounds = array<i64: 8, 256>}, {transform_indices = @transform_1, window_bounds = array<i64: 8, 256>}, {pipeline_mode = #tpu.pipeline_mode<synchronous>, transform_indices = @transform_2, window_bounds = array<i64: 5, 72>}, {pipeline_mode = #tpu.pipeline_mode<synchronous>, transform_indices = @transform_3, window_bounds = array<i64: 5, 1>}, {transform_indices = @transform_4, window_bounds = array<i64: 5, 256>}]} {
    %c0 = arith.constant 0 : index
    %c0_0 = arith.constant 0 : index
    %0 = vector.load %arg1[%c0, %c0_0] : memref<8x256xbf16, #tpu.memory_space<vmem>>, vector<8x256xbf16>
    %c0_1 = arith.constant 0 : index
    %c0_2 = arith.constant 0 : index
    %1 = vector.load %arg2[%c0_1, %c0_2] : memref<8x256xbf16, #tpu.memory_space<vmem>>, vector<8x256xbf16>
    %2 = tpu.concatenate %0, %1 in 1 : vector<8x256xbf16>, vector<8x256xbf16> -> vector<8x512xbf16>
    %3 = vector.extract_strided_slice %2 {offsets = [0, 0], sizes = [8, 256], strides = [1, 1]} : vector<8x512xbf16> to vector<8x256xbf16>
    %4 = vector.extract_strided_slice %2 {offsets = [0, 1], sizes = [8, 256], strides = [1, 1]} : vector<8x512xbf16> to vector<8x256xbf16>
    %5 = vector.extract_strided_slice %2 {offsets = [0, 2], sizes = [8, 256], strides = [1, 1]} : vector<8x512xbf16> to vector<8x256xbf16>
    %6 = vector.extract_strided_slice %2 {offsets = [0, 10], sizes = [8, 256], strides = [1, 1]} : vector<8x512xbf16> to vector<8x256xbf16>
    %7 = vector.extract_strided_slice %2 {offsets = [0, 11], sizes = [8, 256], strides = [1, 1]} : vector<8x512xbf16> to vector<8x256xbf16>
    %8 = vector.extract_strided_slice %2 {offsets = [0, 12], sizes = [8, 256], strides = [1, 1]} : vector<8x512xbf16> to vector<8x256xbf16>
    %9 = vector.extract_strided_slice %2 {offsets = [0, 20], sizes = [8, 256], strides = [1, 1]} : vector<8x512xbf16> to vector<8x256xbf16>
    %10 = vector.extract_strided_slice %2 {offsets = [0, 21], sizes = [8, 256], strides = [1, 1]} : vector<8x512xbf16> to vector<8x256xbf16>
    %11 = vector.extract_strided_slice %2 {offsets = [0, 22], sizes = [8, 256], strides = [1, 1]} : vector<8x512xbf16> to vector<8x256xbf16>
    %12 = tpu.concatenate %3, %4, %5, %6, %7, %8, %9, %10, %11 in 0 : vector<8x256xbf16>, vector<8x256xbf16>, vector<8x256xbf16>, vector<8x256xbf16>, vector<8x256xbf16>, vector<8x256xbf16>, vector<8x256xbf16>, vector<8x256xbf16>, vector<8x256xbf16> -> vector<72x256xbf16>
    %c0_3 = arith.constant 0 : index
    %c0_4 = arith.constant 0 : index
    %13 = vector.load %arg3[%c0_3, %c0_4] : memref<5x72xbf16, #tpu.memory_space<vmem>>, vector<5x72xbf16>
    %cst = arith.constant dense<0.000000e+00> : vector<5x256xf32>
    %14 = tpu.matmul %13, %12, %cst {dimension_numbers = #tpu.dot_dimension_numbers<[1], [0], [0], [1], [0, 0, 1, 1], [], []>} : vector<5x72xbf16>, vector<72x256xbf16>, vector<5x256xf32> -> vector<5x256xf32>
    %c0_5 = arith.constant 0 : index
    %c0_6 = arith.constant 0 : index
    %15 = vector.load %arg4[%c0_5, %c0_6] : memref<5x1xf32, #tpu.memory_space<vmem>>, vector<5x1xf32>
    %16 = vector.broadcast %15 : vector<5x1xf32> to vector<5x256xf32>
    %17 = arith.addf %14, %16 : vector<5x256xf32>
    %18 = arith.truncf %17 : vector<5x256xf32> to vector<5x256xbf16>
    %c0_7 = arith.constant 0 : index
    %c0_8 = arith.constant 0 : index
    %19 = vector.load %arg5[%c0_7, %c0_8] : memref<5x256xbf16, #tpu.memory_space<vmem>>, vector<5x256xbf16>
    tpu.vector_store %arg5[%c0_7, %c0_8], %18 {strides = array<i32>} : memref<5x256xbf16, #tpu.memory_space<vmem>>, vector<5x256xbf16>,
    return
  }
  func.func @transform_0(%arg0: i32) -> (i32, i32) {
    %c0_i32 = arith.constant 0 : i32
    %c0_i32_0 = arith.constant 0 : i32
    return %c0_i32, %arg0 : i32, i32
  }
  func.func @transform_1(%arg0: i32) -> (i32, i32) {
    %c1_i32 = arith.constant 1 : i32
    %0 = arith.addi %arg0, %c1_i32 : i32
    %c0_i32 = arith.constant 0 : i32
    %c0_i32_0 = arith.constant 0 : i32
    return %c0_i32, %0 : i32, i32
  }
  func.func @transform_2(%arg0: i32) -> (i32, i32) {
    %c0_i32 = arith.constant 0 : i32
    %c0_i32_0 = arith.constant 0 : i32
    %c0_i32_1 = arith.constant 0 : i32
    return %c0_i32, %c0_i32_0 : i32, i32
  }
  func.func @transform_3(%arg0: i32) -> (i32, i32) {
    %c0_i32 = arith.constant 0 : i32
    %c0_i32_0 = arith.constant 0 : i32
    %c0_i32_1 = arith.constant 0 : i32
    return %c0_i32, %c0_i32_0 : i32, i32
  }
  func.func @transform_4(%arg0: i32) -> (i32, i32) {
    %c0_i32 = arith.constant 0 : i32
    %c0_i32_0 = arith.constant 0 : i32
    return %c0_i32, %arg0 : i32, i32
  }
}

</mosaic_0001>

<bundles_post_ra>
// kernel: tpu_custom_call.1
= control target key start
LH: loop header
LB: loop body
LE: loop exit
PB: predicated region body
PF: predicated region fallthrough
CT: control target
= control target key end

     0   :  { %9 = vsyncpa [#allocation3], 0  ;;  %s436_s0 = inlined_call_operand.hbm [shape: bf16[8,512], index: 0, kind: input, shape index: {}]   ;;  %s437_s1 = inlined_call_operand.hbm [shape: bf16[8,512], index: 1, kind: input, shape index: {}]   ;;  %s438_s2 = inlined_call_operand.vmem [shape: bf16[5,72], index: 2, kind: input, shape index: {}]   ;;  %s439_s3 = inlined_call_operand.vmem [shape: f32[5,1], index: 3, kind: input, shape index: {}]   ;;  %s440_s4 = inlined_call_operand.hbm [shape: bf16[5,256], index: 4, kind: output, shape index: {}]  }
   0x1   :  { %10 = vsyncpa [#allocation6], 0 }
   0x2   :  { %11 = vsyncpa [#allocation4], 0  ;;  %s259_s17 = scalar_lea.hbm %s437_s1, 128  ;;  %s352_s18 = smov [#allocation2]  }
   0x3   :  { %s18_s19 = sshll.u32 %s352_s18, 4  ;;  %s353_s20 = smov [#allocation5]   ;;  %s19_s19 = int_to_ptr.vmem [resolvable:$true] %s18_s19 }
   0x4   :  { %s32_s21 = sshll.u32 %s353_s20, 4  ;;  %s291_s22 = scalar_lea.vmem %s19_s19, 128  ;;  %s33_s21 = int_to_ptr.vmem [resolvable:$true] %s32_s21 }
   0x5   :  { %p292_p0 = scmp.ne.s32.totalorder %s19_s19, %s291_s22  ;;  %p296_p1 = scmp.lt.s32.totalorder %s19_s19, %s19_s19 }
   0x6   :  { %p297_p2 = scmp.lt.s32.totalorder %s291_s22, %s291_s22 }
   0x8   :  { %p298_p3 = por %p297_p2, %p296_p1 }
   0xa   :  { %p299_p4 = pnand %p298_p3, %p292_p0 }
   0xc   :  { %302 = shalt.err (!%p299_p4)
}
   0xd   :  { %21 = dma.hbm_to_vmem [thread:$0]  %s436_s0, 128, %s19_s19, [#allocation3]  }
   0xe   :  { %s313_s25 = scalar_lea.vmem %s33_s21, 128  ;;  %p318_p6 = scmp.lt.s32.totalorder %s33_s21, %s33_s21 }
   0xf   :  { %p314_p5 = scmp.ne.s32.totalorder %s33_s21, %s313_s25  ;;  %p319_p7 = scmp.lt.s32.totalorder %s313_s25, %s313_s25 }
  0x11   :  { %p320_p8 = por %p319_p7, %p318_p6 }
  0x13   :  { %p321_p9 = pnand %p320_p8, %p314_p5 }
  0x15   :  { %324 = shalt.err (!%p321_p9)
}
  0x16   :  { %35 = dma.hbm_to_vmem [thread:$0]  %s259_s17, 128, %s33_s21, [#allocation6]  }
  0x17   :  { %346 = dma.done.wait [#allocation3], 128  }
  0x18   :  { %347 = vsyncadd [#allocation3], 4294967168 }
  0x19   :  { %348 = dma.done.wait [#allocation6], 128  }
  0x1a   :  { %349 = vsyncadd [#allocation6], 4294967168  ;;  %v280_v0 = vld [vmem:[#allocation5] ss:$0 sps:$4 sm:$0xff]   ;;  %v49_v1 = vld [vmem:[#allocation2] sm:$0xff]  ;;  %s354_s1 = smov 106  }
  0x1b   :  { %v395_v2 = vcombine.low %v49_v1, %v49_v1  ;;  %129 = vrot.lane.b32.xlu1 %v280_v0, %s354_s1  ;;  %v397_v3 = vcombine.high %v49_v1, %v49_v1  ;;  %s355_s0 = smov 108   ;;  %s356_s26 = smov 107   ;;  %v361_v4 = vmov 0   ;;  %v168_v5 = vld [vmem:[%s439_s3] sm:$0x1f]  ;;  %vm131_vm0 = vcmask 867328  }
  0x1c   :  { %s357_s27 = smov 117   ;;  %s358_s28 = smov 116   ;;  %216 = vmatprep.mubr.bf16.mxu0 %v361_v4  ;;  %279 = vset.pattern.permute.xlu0 %v361_v4  ;;  %vm134_vm1 = vcmask 1043456   ;;  %vm113_vm2 = vcmask 883712   ;;  %vm122_vm3 = vcmask 875520   ;;  %vm95_vm4 = vcmask 957440  }
  0x1d   :  { %125 = vrot.lane.b32.xlu0 %v395_v2, %s354_s1  ;;  %s359_s29 = smov 126   ;;  %s360_s30 = smov 118   ;;  %vm104_vm5 = vcmask 949248   ;;  %vm77_vm6 = vcmask 1031168   ;;  %vm86_vm7 = vcmask 965632   ;;  %vm68_vm8 = vcmask 1039360  }
  0x1e   :  { %s362_s5 = smov 127   ;;  %v167_v55 = vld [vmem:[%s438_s2] sm:$0x7]  ;;  %vm174_vm9 = vcmask 588800   ;;  %vm233_vm10 = vcmask 1042432   ;;  %vm236_vm12 = vcmask 1046532  }
  0x1f   :  { %109 = vrot.lane.b32.xlu1 %v397_v3, %s355_s0  ;;  %vm234_vm11 = vsmask.f32 2304  ;;  %vm237_vm13 = vsmask.f32 6400  ;;  %s363_s9 = smov [#allocation7]  }
  0x20   :  { %vm235_vm14 = vmand %vm233_vm10, %vm234_vm11  ;;  %s249_s10 = sshll.u32 %s363_s9, 4  ;;  %v240_v62 = vld [vmem:[#allocation7] sm:$0x77]  ;;  %s250_s10 = int_to_ptr.vmem [resolvable:$true] %s249_s10 }
  0x21   :  { %127 = vrot.lane.b32.xlu0 %v397_v3, %s354_s1  ;;  %vm238_vm15 = vmand %vm236_vm12, %vm237_vm13  ;;  %s326_s2 = scalar_lea.vmem %s250_s10, 128  ;;  %p331_p11 = scmp.lt.s32.totalorder %s250_s10, %s250_s10 }
  0x22   :  { %p327_p10 = scmp.ne.s32.totalorder %s250_s10, %s326_s2  ;;  %p332_p12 = scmp.lt.s32.totalorder %s326_s2, %s326_s2 }
  0x23   :  { %118 = vrot.lane.b32.xlu1 %v397_v3, %s356_s26 }
  0x24   :  { %p333_p13 = por %p332_p12, %p331_p11 }
  0x25   :  { %111 = vrot.lane.b32.xlu0 %v280_v0, %s355_s0 }
  0x26   :  { %p334_p0 = pnand %p333_p13, %p327_p10 }
  0x27   :  { %107 = vrot.lane.b32.xlu1 %v395_v2, %s355_s0 }
  0x29   :  { %120 = vrot.lane.b32.xlu0 %v280_v0, %s356_s26 }
  0x2b   :  { %91 = vrot.lane.b32.xlu1 %v397_v3, %s357_s27 }
  0x2d   :  { %116 = vrot.lane.b32.xlu0 %v395_v2, %s356_s26 }
  0x2f   :  { %100 = vrot.lane.b32.xlu1 %v397_v3, %s358_s28 }
  0x31   :  { %93 = vrot.lane.b32.xlu0 %v280_v0, %s357_s27 }
  0x33   :  { %89 = vrot.lane.b32.xlu1 %v395_v2, %s357_s27 }
  0x35   :  { %102 = vrot.lane.b32.xlu0 %v280_v0, %s358_s28 }
  0x37   :  { %73 = vrot.lane.b32.xlu1 %v397_v3, %s359_s29 }
  0x39   :  { %98 = vrot.lane.b32.xlu0 %v395_v2, %s358_s28 }
  0x3b   :  { %82 = vrot.lane.b32.xlu1 %v397_v3, %s360_s30 }
  0x3d   :  { %75 = vrot.lane.b32.xlu0 %v280_v0, %s359_s29 }
  0x3f   :  { %71 = vrot.lane.b32.xlu1 %v395_v2, %s359_s29 }
  0x41   :  { %84 = vrot.lane.b32.xlu0 %v280_v0, %s360_s30 }
  0x43   :  { %64 = vrot.lane.b32.xlu1 %v397_v3, %s362_s5 }
  0x45   :  { %80 = vrot.lane.b32.xlu0 %v395_v2, %s360_s30 }
  0x47   :  { %62 = vrot.lane.b32.xlu1 %v395_v2, %s362_s5 }
  0x49   :  { %66 = vrot.lane.b32.xlu0 %v280_v0, %s362_s5 }
  0x4d   :  { %171 = vperm.xlu0 %279, %v168_v5  }
  0x8d   :  { %v130_v6 = vpop.permute.xlu1 %129 }
  0x8f   :  { %v126_v7 = vpop.permute.xlu0 %125 }
  0x91   :  { %v110_v8 = vpop.permute.xlu1 %109 }
  0x93   :  { %v128_v9 = vpop.permute.xlu0 %127 }
  0x94   :  { %v133_v10 = vsel %vm131_vm0, %v128_v9, %v130_v6  ;;  %v132_v11 = vsel %vm131_vm0, %v126_v7, %v128_v9  ;;  %vm239_vm0 = vmor %vm238_vm15, %vm235_vm14 }
  0x95   :  { %263 = vmatprep.subr.msk.bf16.mxu0 %vm134_vm1, %v133_v10  ;;  %v179_v12 = vsel %vm134_vm1, %v132_v11, 0  ;;  %v119_v13 = vpop.permute.xlu1 %118 }
  0x96   :  { %191 = vmatpush1.bf16.msra.mxu0 %v179_v12 }
  0x97   :  { %v112_v14 = vpop.permute.xlu0 %111 }
  0x98   :  { %v115_v17 = vsel %vm113_vm2, %v110_v8, %v112_v14 }
  0x99   :  { %v108_v15 = vpop.permute.xlu1 %107 }
  0x9a   :  { %v114_v22 = vsel %vm113_vm2, %v108_v15, %v110_v8 }
  0x9b   :  { %v121_v16 = vpop.permute.xlu0 %120 }
  0x9c   :  { %v124_v18 = vsel %vm122_vm3, %v119_v13, %v121_v16 }
  0x9d   :  { %v165_v19 = vsel %vm134_vm1, %v115_v17, %v124_v18  ;;  %v92_v20 = vpop.permute.xlu1 %91 }
  0x9e   :  { %192 = vmatprep.subr.bf16.mxu0 %v165_v19 }
  0x9f   :  { %v117_v21 = vpop.permute.xlu0 %116 }
  0xa0   :  { %v123_v23 = vsel %vm122_vm3, %v117_v21, %v119_v13 }
  0xa1   :  { %v161_v24 = vsel %vm134_vm1, %v114_v22, %v123_v23  ;;  %v101_v25 = vpop.permute.xlu1 %100 }
  0xa2   :  { %193 = vmatpush1.bf16.msra.mxu0 %v161_v24 }
  0xa3   :  { %v94_v26 = vpop.permute.xlu0 %93 }
  0xa4   :  { %v97_v29 = vsel %vm95_vm4, %v92_v20, %v94_v26 }
  0xa5   :  { %v90_v27 = vpop.permute.xlu1 %89 }
  0xa6   :  { %v96_v34 = vsel %vm95_vm4, %v90_v27, %v92_v20 }
  0xa7   :  { %v103_v28 = vpop.permute.xlu0 %102 }
  0xa8   :  { %v106_v30 = vsel %vm104_vm5, %v101_v25, %v103_v28 }
  0xa9   :  { %v157_v31 = vsel %vm134_vm1, %v97_v29, %v106_v30  ;;  %v74_v32 = vpop.permute.xlu1 %73 }
  0xaa   :  { %194 = vmatprep.subr.bf16.mxu0 %v157_v31 }
  0xab   :  { %v99_v33 = vpop.permute.xlu0 %98 }
  0xac   :  { %v105_v35 = vsel %vm104_vm5, %v99_v33, %v101_v25 }
  0xad   :  { %v153_v36 = vsel %vm134_vm1, %v96_v34, %v105_v35  ;;  %v83_v37 = vpop.permute.xlu1 %82 }
  0xae   :  { %195 = vmatpush1.bf16.msra.mxu0 %v153_v36 }
  0xaf   :  { %v76_v38 = vpop.permute.xlu0 %75 }
  0xb0   :  { %v79_v41 = vsel %vm77_vm6, %v74_v32, %v76_v38 }
  0xb1   :  { %v72_v39 = vpop.permute.xlu1 %71 }
  0xb2   :  { %v78_v46 = vsel %vm77_vm6, %v72_v39, %v74_v32 }
  0xb3   :  { %v85_v40 = vpop.permute.xlu0 %84 }
  0xb4   :  { %v88_v42 = vsel %vm86_vm7, %v83_v37, %v85_v40 }
  0xb5   :  { %v149_v43 = vsel %vm134_vm1, %v79_v41, %v88_v42  ;;  %v65_v44 = vpop.permute.xlu1 %64 }
  0xb6   :  { %196 = vmatprep.subr.bf16.mxu0 %v149_v43 }
  0xb7   :  { %v81_v45 = vpop.permute.xlu0 %80 }
  0xb8   :  { %v87_v47 = vsel %vm86_vm7, %v81_v45, %v83_v37 }
  0xb9   :  { %v145_v48 = vsel %vm134_vm1, %v78_v46, %v87_v47  ;;  %v63_v49 = vpop.permute.xlu1 %62 }
  0xba   :  { %197 = vmatpush1.bf16.msra.mxu0 %v145_v48  ;;  %v69_v50 = vsel %vm68_vm8, %v63_v49, %v65_v44 }
  0xbb   :  { %v67_v51 = vpop.permute.xlu0 %66  ;;  %v137_v54 = vsel %vm134_vm1, %v395_v2, %v69_v50 }
  0xbc   :  { %v70_v52 = vsel %vm68_vm8, %v65_v44, %v67_v51 }
  0xbd   :  { %v141_v53 = vsel %vm134_vm1, %v397_v3, %v70_v52 }
  0xbe   :  { %198 = vmatprep.subr.bf16.mxu0 %v141_v53 }
  0xbf   :  { %199 = vmatpush1.bf16.msra.mxu0 %v137_v54 }
  0xc2   :  { %264 = vmatmul.mubr.msk.bf16.vlgmr.msra.gmra.mxu0 %vm174_vm9, %v167_v55 }
  0xc8   :  { %v172_v57 = vpop.permute.xlu0 %171 }
 0x182   :  { %v218_v56 = vpop.f32.mrf.mxu0 }
 0x183   :  { %v219_v59 = vadd.f32 %v218_v56, %v172_v57 }
 0x184   :  { %v220_v58 = vpop.f32.mrf.mxu0 }
 0x185   :  { %v221_v60 = vadd.f32 %v220_v58, %v172_v57 }
 0x186   :  { %v222_v61 = vpop.f32.mrf.mxu0 }
 0x187   :  { %v266_v63 = vpack.c.bf16 %v221_v60, %v219_v59 }
 0x188   :  { %v223_v0 = vpop.f32.mrf.mxu0 }
 0x189   :  { %v241_v1 = vsel %vm239_vm0, %v266_v63, %v240_v62 }
 0x18a   :  { %242 = vst [vmem:[#allocation7] sm:$0x77] %v241_v1 }
 0x18b   :  { %337 = shalt.err (!%p334_p0)
}
 0x18c   :  { %252 = dma.vmem_to_hbm [thread:$0]  %s250_s10, 128, %s440_s4, [#allocation4]  }
 0x18d   :  { %350 = dma.done.wait [#allocation4], 128  }
 0x18e   :  { %351 = vsyncadd [#allocation4], 4294967168 }
 0x18f   :  { %256 = vsyncpa [#allocation3], 1 }
 0x190   :  { %257 = vsyncpa [#allocation6], 1 }
 0x191   :  { %258 = vsyncpa [#allocation4], 1 }

</bundles_post_ra>
